<compile_context>
chip_gen: v7x
topology: tpu7x:2x2x1
jax: 0.10.0
libtpu: 0.0.40
codegen_flags: <defaults>
</compile_context>

<pallas_src>
import jax
import jax.numpy as jnp
from jax.experimental import pallas as pl
from jax.experimental.pallas import tpu as pltpu

EPS = 1e-5  # nn.LayerNorm default eps


def _simple_attention_kernel(x_ref, wt_ref, p_ref, o_ref):
    x = x_ref[...]                      # (Bb, T, F)
    bb, t, f = x.shape
    wt = wt_ref[...]                    # (F, F) == W^T, laid out (in, out) for the MXU
    params = p_ref[...]                 # (3, F): [bias; gamma; beta]
    b = params[0:1, :]                  # (1, F)
    gamma = params[1:2, :]              # (1, F)
    beta = params[2:3, :]               # (1, F)

    # --- Linear: one fat MXU matmul with M = Bb*T rows (no in-kernel transpose) ---
    h2 = jnp.dot(x.reshape(bb * t, f), wt, preferred_element_type=jnp.float32)

    # --- LayerNorm over the feature axis (biased variance, eps=1e-5, like PyTorch) ---
    h2 = h2 + b
    mean = jnp.mean(h2, axis=-1, keepdims=True)
    var = jnp.mean(jnp.square(h2 - mean), axis=-1, keepdims=True)
    hn2 = (h2 - mean) / jnp.sqrt(var + EPS) * gamma + beta

    # --- Softmax over the sequence axis (PyTorch dim=1 -> axis 1 of the block) ---
    hn = hn2.reshape(bb, t, f)
    m = jnp.max(hn, axis=1, keepdims=True)
    e = jnp.exp(hn - m)
    denom = jnp.sum(e, axis=1, keepdims=True)
    att = e / denom                     # exact divide (approx vrcp caused the mismatch)

    # --- Elementwise gate ---
    o_ref[...] = (x * att).astype(o_ref.dtype)


def simple_attention_1d(x, w, b, gamma, beta, *, batch_block=None):
    """x: (B, T, F). w: (F, F) PyTorch Linear weight (out, in). b/gamma/beta: (F,)."""
    B, T, F = x.shape
    bb = B if batch_block is None else min(batch_block, B)
    assert B % bb == 0, "batch_block must divide B"

    wt = jnp.asarray(w).T                         # hoisted transpose: (in, out)
    params = jnp.stack([b, gamma, beta], axis=0)  # (3, F) packed operand

    return pl.pallas_call(
        _simple_attention_kernel,
        out_shape=jax.ShapeDtypeStruct((B, T, F), x.dtype),
        grid_spec=pltpu.PrefetchScalarGridSpec(
            num_scalar_prefetch=0,
            grid=(B // bb,),
            in_specs=[
                pl.BlockSpec((bb, T, F), lambda i: (i, 0, 0)),  # x slab (whole batch by default)
                pl.BlockSpec((F, F), lambda i: (0, 0)),          # W^T (grid-invariant)
                pl.BlockSpec((3, F), lambda i: (0, 0)),          # packed bias/gamma/beta
            ],
            out_specs=pl.BlockSpec((bb, T, F), lambda i: (i, 0, 0)),
        ),
        compiler_params=pltpu.CompilerParams(
            dimension_semantics=("parallel",)),
    )(x, wt, params)


def _reference(x, w, b, gamma, beta):
    h = jnp.einsum("btf,gf->btg", x, w) + b
    mean = jnp.mean(h, axis=-1, keepdims=True)
    var = jnp.mean((h - mean) ** 2, axis=-1, keepdims=True)
    hn = (h - mean) / jnp.sqrt(var + EPS) * gamma + beta
    att = jax.nn.softmax(hn, axis=1)
    return x * att


if __name__ == "__main__":
    B, T, F = 2, 8, 32  # batch, sequence length, features_dim
    key = jax.random.PRNGKey(0)
    kx, kw, kb = jax.random.split(key, 3)

    x = jax.random.normal(kx, (B, T, F), dtype=jnp.float32)

    # Deterministic parameter init (nn.Linear-like uniform, LayerNorm affine = 1/0).
    bound = 1.0 / jnp.sqrt(F)
    w = jax.random.uniform(kw, (F, F), jnp.float32, -bound, bound)
    b = jax.random.uniform(kb, (F,), jnp.float32, -bound, bound)
    gamma = jnp.ones((F,), jnp.float32)
    beta = jnp.zeros((F,), jnp.float32)

    out = jax.block_until_ready(simple_attention_1d(x, w, b, gamma, beta))
    ref = _reference(x, w, b, gamma, beta)

    assert out.shape == (B, T, F)
    # Exact softmax/LayerNorm math in the kernel -> tight tolerance.
    assert jnp.allclose(out, ref, atol=1e-4, rtol=1e-4), "mismatch vs JAX reference"

    print("KERNEL_OK")
</pallas_src>

<mosaic_0001>
module attributes {stable_mosaic.version = 11 : i64} {
  func.func @_simple_attention_kernel(%arg0: i32, %arg1: memref<2x8x32xf32, #tpu.memory_space<vmem>>, %arg2: memref<32x32xf32, #tpu.memory_space<vmem>>, %arg3: memref<3x32xf32, #tpu.memory_space<vmem>>, %arg4: memref<2x8x32xf32, #tpu.memory_space<vmem>>) attributes {dimension_semantics = [#tpu.dimension_semantics<parallel>], iteration_bounds = array<i64: 1>, scalar_prefetch = 0 : i64, scratch_operands = 0 : i64, tpu.core_type = #tpu.core_type<tc>, window_params = [{transform_indices = @transform_0, window_bounds = array<i64: 2, 8, 32>}, {pipeline_mode = #tpu.pipeline_mode<synchronous>, transform_indices = @transform_1, window_bounds = array<i64: 32, 32>}, {pipeline_mode = #tpu.pipeline_mode<synchronous>, transform_indices = @transform_2, window_bounds = array<i64: 3, 32>}, {transform_indices = @transform_3, window_bounds = array<i64: 2, 8, 32>}]} {
    %c0 = arith.constant 0 : index
    %c0_0 = arith.constant 0 : index
    %c0_1 = arith.constant 0 : index
    %0 = vector.load %arg1[%c0, %c0_0, %c0_1] : memref<2x8x32xf32, #tpu.memory_space<vmem>>, vector<2x8x32xf32>
    %c0_2 = arith.constant 0 : index
    %c0_3 = arith.constant 0 : index
    %1 = vector.load %arg2[%c0_2, %c0_3] : memref<32x32xf32, #tpu.memory_space<vmem>>, vector<32x32xf32>
    %c0_4 = arith.constant 0 : index
    %c0_5 = arith.constant 0 : index
    %2 = vector.load %arg3[%c0_4, %c0_5] : memref<3x32xf32, #tpu.memory_space<vmem>>, vector<3x32xf32>
    %3 = vector.extract_strided_slice %2 {offsets = [0, 0], sizes = [1, 32], strides = [1, 1]} : vector<3x32xf32> to vector<1x32xf32>
    %4 = vector.extract_strided_slice %2 {offsets = [1, 0], sizes = [1, 32], strides = [1, 1]} : vector<3x32xf32> to vector<1x32xf32>
    %5 = vector.extract_strided_slice %2 {offsets = [2, 0], sizes = [1, 32], strides = [1, 1]} : vector<3x32xf32> to vector<1x32xf32>
    %6 = vector.shape_cast %0 : vector<2x8x32xf32> to vector<16x32xf32>
    %cst = arith.constant dense<0.000000e+00> : vector<16x32xf32>
    %7 = tpu.matmul %6, %1, %cst {dimension_numbers = #tpu.dot_dimension_numbers<[1], [0], [0], [1], [0, 0, 1, 1], [], []>} : vector<16x32xf32>, vector<32x32xf32>, vector<16x32xf32> -> vector<16x32xf32>
    %8 = vector.broadcast %3 : vector<1x32xf32> to vector<16x32xf32>
    %9 = arith.addf %7, %8 : vector<16x32xf32>
    %cst_6 = arith.constant dense<0.000000e+00> : vector<16xf32>
    %10 = vector.multi_reduction <add>, %9, %cst_6 [1] : vector<16x32xf32> to vector<16xf32>
    %11 = vector.shape_cast %10 : vector<16xf32> to vector<16x1xf32>
    %cst_7 = arith.constant 3.200000e+01 : f32
    %12 = vector.broadcast %cst_7 : f32 to vector<16x1xf32>
    %13 = arith.divf %11, %12 : vector<16x1xf32>
    %14 = vector.broadcast %13 : vector<16x1xf32> to vector<16x32xf32>
    %15 = arith.subf %9, %14 : vector<16x32xf32>
    %16 = arith.mulf %15, %15 : vector<16x32xf32>
    %cst_8 = arith.constant dense<0.000000e+00> : vector<16xf32>
    %17 = vector.multi_reduction <add>, %16, %cst_8 [1] : vector<16x32xf32> to vector<16xf32>
    %18 = vector.shape_cast %17 : vector<16xf32> to vector<16x1xf32>
    %cst_9 = arith.constant 3.200000e+01 : f32
    %19 = vector.broadcast %cst_9 : f32 to vector<16x1xf32>
    %20 = arith.divf %18, %19 : vector<16x1xf32>
    %21 = vector.broadcast %13 : vector<16x1xf32> to vector<16x32xf32>
    %22 = arith.subf %9, %21 : vector<16x32xf32>
    %cst_10 = arith.constant 9.99999974E-6 : f32
    %23 = vector.broadcast %cst_10 : f32 to vector<16x1xf32>
    %24 = arith.addf %20, %23 : vector<16x1xf32>
    %25 = math.sqrt %24 : vector<16x1xf32>
    %26 = vector.broadcast %25 : vector<16x1xf32> to vector<16x32xf32>
    %27 = arith.divf %22, %26 : vector<16x32xf32>
    %28 = vector.broadcast %4 : vector<1x32xf32> to vector<16x32xf32>
    %29 = arith.mulf %27, %28 : vector<16x32xf32>
    %30 = vector.broadcast %5 : vector<1x32xf32> to vector<16x32xf32>
    %31 = arith.addf %29, %30 : vector<16x32xf32>
    %32 = vector.shape_cast %31 : vector<16x32xf32> to vector<2x8x32xf32>
    %cst_11 = arith.constant dense<0xFF800000> : vector<2x32xf32>
    %33 = vector.multi_reduction <maximumf>, %32, %cst_11 [1] : vector<2x8x32xf32> to vector<2x32xf32>
    %34 = vector.shape_cast %33 : vector<2x32xf32> to vector<2x1x32xf32>
    %35 = vector.broadcast %34 : vector<2x1x32xf32> to vector<2x8x32xf32>
    %36 = arith.subf %32, %35 : vector<2x8x32xf32>
    %37 = math.exp %36 : vector<2x8x32xf32>
    %cst_12 = arith.constant dense<0.000000e+00> : vector<2x32xf32>
    %38 = vector.multi_reduction <add>, %37, %cst_12 [1] : vector<2x8x32xf32> to vector<2x32xf32>
    %39 = vector.shape_cast %38 : vector<2x32xf32> to vector<2x1x32xf32>
    %40 = vector.broadcast %39 : vector<2x1x32xf32> to vector<2x8x32xf32>
    %41 = arith.divf %37, %40 : vector<2x8x32xf32>
    %42 = arith.mulf %0, %41 : vector<2x8x32xf32>
    %c0_13 = arith.constant 0 : index
    %c0_14 = arith.constant 0 : index
    %c0_15 = arith.constant 0 : index
    %43 = vector.load %arg4[%c0_13, %c0_14, %c0_15] : memref<2x8x32xf32, #tpu.memory_space<vmem>>, vector<2x8x32xf32>
    tpu.vector_store %arg4[%c0_13, %c0_14, %c0_15], %42 {strides = array<i32>} : memref<2x8x32xf32, #tpu.memory_space<vmem>>, vector<2x8x32xf32>,
    return
  }
  func.func @transform_0(%arg0: i32) -> (i32, i32, i32) {
    %c0_i32 = arith.constant 0 : i32
    %c0_i32_0 = arith.constant 0 : i32
    %c0_i32_1 = arith.constant 0 : i32
    return %arg0, %c0_i32, %c0_i32_0 : i32, i32, i32
  }
  func.func @transform_1(%arg0: i32) -> (i32, i32) {
    %c0_i32 = arith.constant 0 : i32
    %c0_i32_0 = arith.constant 0 : i32
    %c0_i32_1 = arith.constant 0 : i32
    return %c0_i32, %c0_i32_0 : i32, i32
  }
  func.func @transform_2(%arg0: i32) -> (i32, i32) {
    %c0_i32 = arith.constant 0 : i32
    %c0_i32_0 = arith.constant 0 : i32
    %c0_i32_1 = arith.constant 0 : i32
    return %c0_i32, %c0_i32_0 : i32, i32
  }
  func.func @transform_3(%arg0: i32) -> (i32, i32, i32) {
    %c0_i32 = arith.constant 0 : i32
    %c0_i32_0 = arith.constant 0 : i32
    %c0_i32_1 = arith.constant 0 : i32
    return %arg0, %c0_i32, %c0_i32_0 : i32, i32, i32
  }
}

</mosaic_0001>

<bundles_post_ra>
// kernel: tpu_custom_call.1
= control target key start
LH: loop header
LB: loop body
LE: loop exit
PB: predicated region body
PF: predicated region fallthrough
CT: control target
= control target key end

     0   :  { %8 = vsyncpa [#allocation3], 0  ;;  %s462_s0 = inlined_call_operand.hbm [shape: f32[2,8,32], index: 0, kind: input, shape index: {}]   ;;  %s463_s1 = inlined_call_operand.hbm [shape: f32[32,32], index: 1, kind: input, shape index: {}]   ;;  %s464_s2 = inlined_call_operand.vmem [shape: f32[3,32], index: 2, kind: input, shape index: {}]   ;;  %s465_s3 = inlined_call_operand.hbm [shape: f32[2,8,32], index: 3, kind: output, shape index: {}]  }
   0x1   :  { %9 = vsyncpa [#allocation6], 0 }
   0x2   :  { %10 = vsyncpa [#allocation4], 0  ;;  %s369_s12 = smov [#allocation2]   ;;  %s297_s16 = scalar_lea.hbm %s462_s0, 256 }
   0x3   :  { %s16_s13 = sshll.u32 %s369_s12, 4  ;;  %p298_p0 = scmp.ne.s32.totalorder %s462_s0, %s297_s16  ;;  %s17_s13 = int_to_ptr.vmem [resolvable:$true] %s16_s13 }
   0x4   :  { %p301_p1 = scmp.lt.u32.totalorder %s297_s16, %s462_s0 }
   0x6   :  { %p303_p2 = pnand %p301_p1, %p298_p0 }
   0x8   :  { %306 = shalt.err (!%p303_p2)
}
   0x9   :  { %s307_s21 = scalar_lea.vmem %s17_s13, 256  ;;  %p312_p4 = scmp.lt.s32.totalorder %s17_s13, %s17_s13 }
   0xa   :  { %p308_p3 = scmp.ne.s32.totalorder %s17_s13, %s307_s21  ;;  %p313_p5 = scmp.lt.s32.totalorder %s307_s21, %s307_s21 }
   0xc   :  { %p314_p6 = por %p313_p5, %p312_p4 }
   0xe   :  { %p315_p7 = pnand %p314_p6, %p308_p3 }
  0x10   :  { %318 = shalt.err (!%p315_p7)
}
  0x11   :  { %s370_s22 = smov 128   ;;  %s371_s23 = smov 8  }
  0x12   :  { %22 = dma.hbm_to_vmem [thread:$0]  %s462_s0, 256, %s17_s13, [#allocation3], %s370_s22, %s370_s22, %s371_s23  }
  0x13   :  { %s372_s26 = smov [#allocation5]   ;;  %s319_s30 = scalar_lea.hbm %s463_s1, 512 }
  0x14   :  { %s28_s27 = sshll.u32 %s372_s26, 4  ;;  %p320_p8 = scmp.ne.s32.totalorder %s463_s1, %s319_s30  ;;  %s29_s27 = int_to_ptr.vmem [resolvable:$true] %s28_s27 }
  0x15   :  { %p323_p9 = scmp.lt.u32.totalorder %s319_s30, %s463_s1 }
  0x17   :  { %p325_p10 = pnand %p323_p9, %p320_p8 }
  0x19   :  { %328 = shalt.err (!%p325_p10)
}
  0x1a   :  { %s329_s8 = scalar_lea.vmem %s29_s27, 512  ;;  %p334_p12 = scmp.lt.s32.totalorder %s29_s27, %s29_s27 }
  0x1b   :  { %p330_p11 = scmp.ne.s32.totalorder %s29_s27, %s329_s8  ;;  %p335_p13 = scmp.lt.s32.totalorder %s329_s8, %s329_s8 }
  0x1d   :  { %p336_p0 = por %p335_p13, %p334_p12 }
  0x1f   :  { %p337_p1 = pnand %p336_p0, %p330_p11 }
  0x21   :  { %340 = shalt.err (!%p337_p1)
}
  0x22   :  { %34 = dma.hbm_to_vmem [thread:$0]  %s463_s1, 512, %s29_s27, [#allocation6], %s370_s22, %s370_s22, %s371_s23  }
  0x23   :  { %363 = dma.done.wait [#allocation3], 256  }
  0x24   :  { %364 = vsyncadd [#allocation3], 4294967040 }
  0x25   :  { %365 = dma.done.wait [#allocation6], 512  }
  0x26   :  { %366 = vsyncadd [#allocation6], 4294966784  ;;  %vm54_vm0 = vcmask 261120   ;;  %v45_v0 = vld [vmem:[#allocation5] sm:$0xff]  ;;  %v46_v1 = vld [vmem:[#allocation5 + $0x8] sm:$0xff]  ;;  %v50_v8 = vlaneseq }
  0x27   :  { %v47_v2 = vld [vmem:[#allocation5 + $0x10] sm:$0xff]  ;;  %v268_v3 = vpack.c.bf16 %v46_v1, %v45_v0  ;;  %v48_v4 = vld [vmem:[#allocation5 + $0x18] sm:$0xff] }
  0x28   :  { %v424_v5 = vld [vmem:[#allocation2] sm:$0xff]  ;;  %v272_v6 = vpack.c.bf16 %v48_v4, %v47_v2  ;;  %v428_v7 = vld [vmem:[#allocation2 + $0x8] sm:$0xff]  ;;  %v51_v9 = vshrl.u32 %v50_v8, 7 }
  0x29   :  { %265 = vmatprep.mubr.msk.f32.mxu0 %vm54_vm0, %v424_v5  ;;  %269 = vmatprep.subr.bf16.mxu0 %v268_v3  ;;  %v49_v11 = vld [vmem:[%s464_s2] sm:$0x7]  ;;  %s373_s2 = smov [#allocation7]  }
  0x2a   :  { %271 = vmatpush3.bf16.msra.mxu0 %v268_v3  ;;  %v52_v10 = vsub.s32 0, %v51_v9  ;;  %v179_v45 = vsub.s32 1, %v51_v9  ;;  %v185_v46 = vsub.s32 2, %v51_v9  ;;  %s236_s11 = sshll.u32 %s373_s2, 4  ;;  %s237_s11 = int_to_ptr.vmem [resolvable:$true] %s236_s11 }
  0x2b   :  { %273 = vmatprep.subr.bf16.mxu0 %v272_v6  ;;  %s341_s12 = scalar_lea.vmem %s237_s11, 256  ;;  %p346_p3 = scmp.lt.s32.totalorder %s237_s11, %s237_s11 }
  0x2c   :  { %v53_v12 = vrot.slane %v49_v11, %v52_v10  ;;  %v180_v47 = vrot.slane %v49_v11, %v179_v45  ;;  %v186_v49 = vrot.slane %v49_v11, %v185_v46  ;;  %p342_p2 = scmp.ne.s32.totalorder %s237_s11, %s341_s12  ;;  %p347_p4 = scmp.lt.s32.totalorder %s341_s12, %s341_s12 }
  0x2e   :  { %275 = vmatpush3.bf16.msra.mxu0 %v272_v6  ;;  %p348_p5 = por %p347_p4, %p346_p3 }
  0x30   :  { %p349_p6 = pnand %p348_p5, %p342_p2 }
  0x31   :  { %266 = vmatmul.mubr.msk.f32.vlgmr.msra.gmra.mrb[0].mxu0 %vm54_vm0, %v428_v7 }
 0x104   :  { %v267_v13 = vpop.f32.mrb[0].mxu0 }
 0x105   :  { %v127_v14 = vpop.f32.mrb[1].mxu0  ;;  %v133_v16 = vadd.f32 %v267_v13, %v53_v12 }
 0x106   :  { %v128_v15 = vadd.f32 %v127_v14, %v53_v12 }
 0x107   :  { %v139_v18 = vsel %vm54_vm0, %v133_v16, 0.0 }
 0x108   :  { %v136_v17 = vsel %vm54_vm0, %v128_v15, 0.0 }
 0x109   :  { %137 = vadd.xlane.f32.xlu0 %v136_v17 }
 0x10d   :  { %140 = vadd.xlane.f32.xlu0 %v139_v18 }
 0x196   :  { %v138_v19 = vpop.xlane.xlu0 %137 }
 0x197   :  { %v143_v20 = vmul.f32 0.03125, %v138_v19 }
 0x199   :  { %v145_v21 = vsub.f32 %v128_v15, %v143_v20 }
 0x19a   :  { %v141_v22 = vpop.xlane.xlu0 %140 }
 0x19b   :  { %v144_v23 = vmul.f32 0.03125, %v141_v22  ;;  %v147_v24 = vmul.f32 %v145_v21, %v145_v21 }
 0x19d   :  { %v146_v25 = vsub.f32 %v133_v16, %v144_v23  ;;  %v149_v26 = vsel %vm54_vm0, %v147_v24, 0.0 }
 0x19e   :  { %150 = vadd.xlane.f32.xlu1 %v149_v26 }
 0x19f   :  { %v148_v27 = vmul.f32 %v146_v25, %v146_v25 }
 0x1a1   :  { %v152_v28 = vsel %vm54_vm0, %v148_v27, 0.0 }
 0x1a2   :  { %153 = vadd.xlane.f32.xlu1 %v152_v28 }
 0x22b   :  { %v151_v29 = vpop.xlane.xlu1 %150 }
 0x22c   :  { %v155_v30 = vmul.f32 0.03125, %v151_v29 }
 0x22e   :  { %v157_v31 = vadd.f32 1e-05, %v155_v30 }
 0x22f   :  { %v154_v32 = vpop.xlane.xlu1 %153 }
 0x230   :  { %281 = vrsqrt.f32 %v157_v31  ;;  %v156_v33 = vmul.f32 0.03125, %v154_v32  ;;  %vm161_vm1 = vcmp.eq.f32.partialorder %v157_v31, inf  ;;  %v164_v37 = vand.u32 2147483648, %v157_v31 }
 0x231   :  { %vm163_vm2 = vcmp.eq.f32.partialorder %v157_v31, 0.0 }
 0x232   :  { %v158_v34 = vadd.f32 1e-05, %v156_v33 }
 0x234   :  { %283 = vrsqrt.f32 %v158_v34  ;;  %vm168_vm3 = vcmp.eq.f32.partialorder %v158_v34, inf  ;;  %v171_v42 = vand.u32 2147483648, %v158_v34  ;;  %vm170_vm4 = vcmp.eq.f32.partialorder %v158_v34, 0.0 }
 0x23a   :  { %v282_v35 = vpop.eup %281 }
 0x23b   :  { %v160_v36 = vmul.f32 %v282_v35, %v157_v31 }
 0x23d   :  { %v162_v38 = vsel %vm161_vm1, %v157_v31, %v160_v36 }
 0x23e   :  { %v165_v39 = vsel %vm163_vm2, %v164_v37, %v162_v38  ;;  %v284_v40 = vpop.eup %283 }
 0x23f   :  { %285 = vrcp.f32 %v165_v39  ;;  %v167_v41 = vmul.f32 %v284_v40, %v158_v34 }
 0x241   :  { %v169_v43 = vsel %vm168_vm3, %v158_v34, %v167_v41 }
 0x242   :  { %v172_v44 = vsel %vm170_vm4, %v171_v42, %v169_v43 }
 0x243   :  { %287 = vrcp.f32 %v172_v44 }
 0x249   :  { %v286_v48 = vpop.eup %285 }
 0x24a   :  { %v174_v50 = vmul.f32 %v286_v48, %v145_v21 }
 0x24c   :  { %v181_v51 = vmul.f32 %v180_v47, %v174_v50 }
 0x24d   :  { %v288_v52 = vpop.eup %287 }
 0x24e   :  { %v187_v53 = vadd.f32 %v186_v49, %v181_v51  ;;  %v176_v54 = vmul.f32 %v288_v52, %v146_v25 }
 0x250   :  { %v189_v55 = vsel %vm54_vm0, %v187_v53, -inf  ;;  %v182_v56 = vmul.f32 %v180_v47, %v176_v54 }
 0x251   :  { %v190_v57 = vrot.slane %v189_v55, 4 }
 0x252   :  { %v188_v58 = vadd.f32 %v186_v49, %v182_v56 }
 0x253   :  { %v191_v59 = vmax.f32 %v189_v55, %v190_v57 }
 0x254   :  { %v196_v61 = vsel %vm54_vm0, %v188_v58, -inf }
 0x255   :  { %v192_v60 = vrot.slane %v191_v59, 2  ;;  %v197_v62 = vrot.slane %v196_v61, 4 }
 0x257   :  { %v193_v63 = vmax.f32 %v191_v59, %v192_v60  ;;  %v198_v0 = vmax.f32 %v196_v61, %v197_v62 }
 0x259   :  { %v194_v1 = vrot.slane %v193_v63, 1  ;;  %v199_v2 = vrot.slane %v198_v0, 2 }
 0x25b   :  { %v195_v3 = vmax.f32 %v193_v63, %v194_v1  ;;  %v200_v4 = vmax.f32 %v198_v0, %v199_v2 }
 0x25d   :  { %v203_v6 = vsub.f32 %v187_v53, %v195_v3  ;;  %v201_v8 = vrot.slane %v200_v4, 1 }
 0x25f   :  { %v205_v9 = vmul.f32 1.442695, %v203_v6  ;;  %v202_v10 = vmax.f32 %v200_v4, %v201_v8 }
 0x261   :  { %289 = vpow2.f32 %v205_v9  ;;  %v204_v11 = vsub.f32 %v188_v58, %v202_v10 }
 0x263   :  { %v207_v12 = vmul.f32 1.442695, %v204_v11 }
 0x265   :  { %291 = vpow2.f32 %v207_v12 }
 0x26b   :  { %v290_v13 = vpop.eup %289 }
 0x26c   :  { %v209_v14 = vsel %vm54_vm0, %v290_v13, 0.0 }
 0x26d   :  { %v210_v15 = vrot.slane %v209_v14, 4 }
 0x26f   :  { %v211_v16 = vadd.f32 %v210_v15, %v209_v14  ;;  %v292_v17 = vpop.eup %291 }
 0x270   :  { %v216_v19 = vsel %vm54_vm0, %v292_v17, 0.0 }
 0x271   :  { %v212_v18 = vrot.slane %v211_v16, 2  ;;  %v217_v20 = vrot.slane %v216_v19, 4 }
 0x273   :  { %v213_v21 = vadd.f32 %v212_v18, %v211_v16  ;;  %v218_v22 = vadd.f32 %v217_v20, %v216_v19 }
 0x275   :  { %v214_v23 = vrot.slane %v213_v21, 1  ;;  %v219_v24 = vrot.slane %v218_v22, 2 }
 0x277   :  { %v215_v25 = vadd.f32 %v214_v23, %v213_v21  ;;  %v220_v26 = vadd.f32 %v219_v24, %v218_v22 }
 0x279   :  { %293 = vrcp.f32 %v215_v25  ;;  %v221_v27 = vrot.slane %v220_v26, 1 }
 0x27b   :  { %v222_v28 = vadd.f32 %v221_v27, %v220_v26 }
 0x27d   :  { %295 = vrcp.f32 %v222_v28 }
 0x283   :  { %v294_v29 = vpop.eup %293 }
 0x284   :  { %v224_v30 = vmul.f32 %v294_v29, %v290_v13 }
 0x286   :  { %v227_v31 = vmul.f32 %v224_v30, %v424_v5 }
 0x287   :  { %v296_v32 = vpop.eup %295 }
 0x288   :  { %229 = vst.msk [vmem:[#allocation7] sm:$0xff] %vm54_vm0, %v227_v31  ;;  %v226_v33 = vmul.f32 %v296_v32, %v292_v17 }
 0x28a   :  { %v228_v34 = vmul.f32 %v226_v33, %v428_v7 }
 0x28c   :  { %230 = vst.msk [vmem:[#allocation7 + $0x8] sm:$0xff] %vm54_vm0, %v228_v34 }
 0x28d   :  { %352 = shalt.err (!%p349_p6)
}
 0x28e   :  { %s353_s15 = scalar_lea.hbm %s465_s3, 256 }
 0x28f   :  { %p354_p7 = scmp.ne.s32.totalorder %s465_s3, %s353_s15  ;;  %p357_p8 = scmp.lt.u32.totalorder %s353_s15, %s465_s3 }
 0x291   :  { %p359_p9 = pnand %p357_p8, %p354_p7 }
 0x293   :  { %362 = shalt.err (!%p359_p9)
}
 0x294   :  { %242 = dma.vmem_to_hbm [thread:$0]  %s237_s11, 256, %s465_s3, [#allocation4], %s370_s22, %s370_s22, %s371_s23  }
 0x295   :  { %367 = dma.done.wait [#allocation4], 256  }
 0x296   :  { %368 = vsyncadd [#allocation4], 4294967040 }
 0x297   :  { %246 = vsyncpa [#allocation3], 1 }
 0x298   :  { %247 = vsyncpa [#allocation6], 1 }
 0x299   :  { %248 = vsyncpa [#allocation4], 1 }

</bundles_post_ra>
